<compile_context>
chip_gen: v7x
topology: tpu7x:2x2x1
jax: 0.10.0
libtpu: 0.0.40
codegen_flags: <defaults>
</compile_context>

<pallas_src>
import jax
import jax.numpy as jnp
from jax.experimental import pallas as pl
from jax.experimental.pallas import tpu as pltpu

LANES = 128
_TARGET_BLOCK_BYTES = 2 * 1024 * 1024   # ~2 MiB per block buffer (gridded path)
_SINGLE_BLOCK_BYTES = 4 * 1024 * 1024   # below this: single block, no grid


def _make_lambda_kernel(fn):
    def kernel(x_ref, o_ref):
        o_ref[...] = fn(x_ref[...]).astype(o_ref.dtype)
    return kernel


def _sublanes(itemsize):
    # Native sublane packing: 4-byte -> 8, 2-byte -> 16, 1-byte -> 32.
    return max(8, 32 // itemsize)


def pallas_lambda(fn, x):
    """Apply elementwise `fn` to `x` (any shape, e.g. NCHW) via a Pallas kernel."""
    orig_shape = x.shape
    dtype = x.dtype
    n = x.size
    itemsize = jnp.dtype(dtype).itemsize

    kernel = _make_lambda_kernel(fn)
    cost = pl.CostEstimate(
        flops=2 * n,                     # mul + (sigmoid internals mostly EUP)
        transcendentals=n,               # one exp per element for sigmoid
        bytes_accessed=2 * n * itemsize, # read + write
    )

    flat = x.reshape(-1)
    # Lane-dense slab [rows, 128].  Typical NCHW activation sizes are already
    # a multiple of 128, so this is a free reshape (no pad / no slice copies).
    if n % LANES == 0:
        slab = flat.reshape(-1, LANES)
        ragged = False
    else:
        pad = LANES - (n % LANES)
        slab = jnp.pad(flat, (0, pad)).reshape(-1, LANES)
        ragged = True

    rows = slab.shape[0]
    slab_bytes = rows * LANES * itemsize

    if slab_bytes <= _SINGLE_BLOCK_BYTES:
        # Whole slab fits comfortably in VMEM: single DMA in / compute / out.
        out = pl.pallas_call(
            kernel,
            out_shape=jax.ShapeDtypeStruct((rows, LANES), dtype),
            cost_estimate=cost,
        )(slab)
    else:
        sub = _sublanes(itemsize)
        tile_rows = max(sub, (_TARGET_BLOCK_BYTES // (LANES * itemsize)) // sub * sub)
        grid = (pl.cdiv(rows, tile_rows),)  # partial last block masked by Pallas
        out = pl.pallas_call(
            kernel,
            out_shape=jax.ShapeDtypeStruct((rows, LANES), dtype),
            grid=grid,
            in_specs=[pl.BlockSpec((tile_rows, LANES), lambda i: (i, 0))],
            out_specs=pl.BlockSpec((tile_rows, LANES), lambda i: (i, 0)),
            compiler_params=pltpu.CompilerParams(
                dimension_semantics=("parallel",)),
            cost_estimate=cost,
        )(slab)

    if ragged:
        return out.reshape(-1)[:n].reshape(orig_shape)
    return out.reshape(orig_shape)


if __name__ == "__main__":
    # Lambda has no parameters — nothing to initialize.
    # Concrete fn: Swish (x * sigmoid(x)), the typical Lambda in EfficientNet.
    swish = lambda x: x * jax.nn.sigmoid(x)

    key = jax.random.PRNGKey(0)

    # 1) Primary small NCHW input (single-block path, lane-aligned, no pad).
    x = jax.random.normal(key, (2, 4, 16, 16), dtype=jnp.float32)
    y = pallas_lambda(swish, x)
    jax.block_until_ready(y)
    y_ref = swish(x)
    assert y.shape == x.shape and y.dtype == x.dtype
    assert jnp.allclose(y, y_ref, atol=1e-6, rtol=1e-6)

    # 2) Ragged size (not a multiple of 128) — exercises the pad/slice fallback.
    k1, k2 = jax.random.split(key)
    x_ragged = jax.random.normal(k1, (5, 3, 7, 7), dtype=jnp.float32)
    y_ragged = pallas_lambda(swish, x_ragged)
    jax.block_until_ready(y_ragged)
    assert jnp.allclose(y_ragged, swish(x_ragged), atol=1e-6, rtol=1e-6)

    # 3) Larger activation — exercises the gridded path with a partial last block.
    x_big = jax.random.normal(k2, (4, 24, 120, 120), dtype=jnp.float32)  # ~5.3 MiB
    y_big = pallas_lambda(swish, x_big)
    jax.block_until_ready(y_big)
    assert jnp.allclose(y_big, swish(x_big), atol=1e-6, rtol=1e-6)

    print("KERNEL_OK")
</pallas_src>

<mosaic_0001>
module attributes {stable_mosaic.version = 11 : i64} {
  func.func @kernel(%arg0: memref<16x128xf32, #tpu.memory_space<vmem>>, %arg1: memref<16x128xf32, #tpu.memory_space<vmem>>) attributes {dimension_semantics = [], scalar_prefetch = 0 : i64, scratch_operands = 0 : i64, tpu.core_type = #tpu.core_type<tc>} {
    %c0 = arith.constant 0 : index
    %c0_0 = arith.constant 0 : index
    %0 = vector.load %arg0[%c0, %c0_0] : memref<16x128xf32, #tpu.memory_space<vmem>>, vector<16x128xf32>
    %1 = arith.negf %0 : vector<16x128xf32>
    %2 = math.exp %1 : vector<16x128xf32>
    %cst = arith.constant 1.000000e+00 : f32
    %3 = vector.broadcast %cst : f32 to vector<16x128xf32>
    %4 = arith.addf %3, %2 : vector<16x128xf32>
    %5 = arith.divf %3, %4 : vector<16x128xf32>
    %6 = arith.mulf %0, %5 : vector<16x128xf32>
    %c0_1 = arith.constant 0 : index
    %c0_2 = arith.constant 0 : index
    %7 = vector.load %arg1[%c0_1, %c0_2] : memref<16x128xf32, #tpu.memory_space<vmem>>, vector<16x128xf32>
    tpu.vector_store %arg1[%c0_1, %c0_2], %6 {strides = array<i32>} : memref<16x128xf32, #tpu.memory_space<vmem>>, vector<16x128xf32>,
    return
  }
}

</mosaic_0001>

<bundles_post_ra>
// kernel: tpu_custom_call.1
= control target key start
LH: loop header
LB: loop body
LE: loop exit
PB: predicated region body
PF: predicated region fallthrough
CT: control target
= control target key end

     0   :  { %6 = vsyncpa [#allocation3], 0  ;;  %s164_s0 = inlined_call_operand.hbm [shape: f32[16,128], index: 0, kind: input, shape index: {}]   ;;  %s165_s1 = inlined_call_operand.hbm [shape: f32[16,128], index: 1, kind: output, shape index: {}]  }
   0x1   :  { %7 = vsyncpa [#allocation4], 0  ;;  %s120_s6 = smov [#allocation2]   ;;  %s72_s10 = scalar_lea.hbm %s164_s0, 256 }
   0x2   :  { %s13_s7 = sshll.u32 %s120_s6, 4  ;;  %p73_p0 = scmp.ne.s32.totalorder %s164_s0, %s72_s10  ;;  %s14_s7 = int_to_ptr.vmem [resolvable:$true] %s13_s7 }
   0x3   :  { %p76_p1 = scmp.lt.u32.totalorder %s72_s10, %s164_s0 }
   0x5   :  { %p78_p2 = pnand %p76_p1, %p73_p0 }
   0x7   :  { %81 = shalt.err (!%p78_p2)
}
   0x8   :  { %s82_s15 = scalar_lea.vmem %s14_s7, 256  ;;  %p87_p4 = scmp.lt.s32.totalorder %s14_s7, %s14_s7 }
   0x9   :  { %p83_p3 = scmp.ne.s32.totalorder %s14_s7, %s82_s15  ;;  %p88_p5 = scmp.lt.s32.totalorder %s82_s15, %s82_s15 }
   0xb   :  { %p89_p6 = por %p88_p5, %p87_p4 }
   0xd   :  { %p90_p7 = pnand %p89_p6, %p83_p3 }
   0xf   :  { %93 = shalt.err (!%p90_p7)
}
  0x10   :  { %s121_s16 = smov 128   ;;  %s122_s17 = smov 8  }
  0x11   :  { %19 = dma.hbm_to_vmem [thread:$0]  %s164_s0, 256, %s14_s7, [#allocation3], %s121_s16, %s121_s16, %s122_s17  }
  0x12   :  { %116 = dma.done.wait [#allocation3], 256  }
  0x13   :  { %117 = vsyncadd [#allocation3], 4294967040  ;;  %v23_v0 = vld [vmem:[#allocation2] sm:$0xff]  ;;  %v24_v1 = vld [vmem:[#allocation2 + $0x8] sm:$0xff]  ;;  %s123_s20 = smov [#allocation5]  }
  0x14   :  { %v58_v2 = vmul.f32 -1.442695, %v23_v0  ;;  %v59_v3 = vmul.f32 -1.442695, %v24_v1  ;;  %s46_s21 = sshll.u32 %s123_s20, 4  ;;  %s47_s21 = int_to_ptr.vmem [resolvable:$true] %s46_s21 }
  0x15   :  { %s94_s0 = scalar_lea.vmem %s47_s21, 256  ;;  %p99_p9 = scmp.lt.s32.totalorder %s47_s21, %s47_s21 }
  0x16   :  { %64 = vpow2.f32 %v58_v2  ;;  %p95_p8 = scmp.ne.s32.totalorder %s47_s21, %s94_s0  ;;  %p100_p10 = scmp.lt.s32.totalorder %s94_s0, %s94_s0 }
  0x17   :  { %66 = vpow2.f32 %v59_v3 }
  0x18   :  { %p101_p11 = por %p100_p10, %p99_p9 }
  0x1a   :  { %p102_p12 = pnand %p101_p11, %p95_p8 }
  0x20   :  { %v65_v4 = vpop.eup %64 }
  0x21   :  { %v67_v5 = vpop.eup %66  ;;  %v31_v6 = vadd.f32 1.0, %v65_v4 }
  0x22   :  { %v32_v7 = vadd.f32 1.0, %v67_v5 }
  0x23   :  { %68 = vrcp.f32 %v31_v6 }
  0x24   :  { %70 = vrcp.f32 %v32_v7 }
  0x2d   :  { %v69_v8 = vpop.eup %68 }
  0x2e   :  { %v71_v9 = vpop.eup %70  ;;  %v37_v10 = vmul.f32 %v69_v8, %v23_v0 }
  0x2f   :  { %v38_v11 = vmul.f32 %v71_v9, %v24_v1 }
  0x30   :  { %39 = vst [vmem:[#allocation5] sm:$0xff] %v37_v10 }
  0x31   :  { %40 = vst [vmem:[#allocation5 + $0x8] sm:$0xff] %v38_v11 }
  0x32   :  { %105 = shalt.err (!%p102_p12)
}
  0x33   :  { %s106_s24 = scalar_lea.hbm %s165_s1, 256 }
  0x34   :  { %p107_p13 = scmp.ne.s32.totalorder %s165_s1, %s106_s24  ;;  %p110_p0 = scmp.lt.u32.totalorder %s106_s24, %s165_s1 }
  0x36   :  { %p112_p1 = pnand %p110_p0, %p107_p13 }
  0x38   :  { %115 = shalt.err (!%p112_p1)
}
  0x39   :  { %52 = dma.vmem_to_hbm [thread:$0]  %s47_s21, 256, %s165_s1, [#allocation4], %s121_s16, %s121_s16, %s122_s17  }
  0x3a   :  { %118 = dma.done.wait [#allocation4], 256  }
  0x3b   :  { %119 = vsyncadd [#allocation4], 4294967040 }
  0x3c   :  { %56 = vsyncpa [#allocation3], 1 }
  0x3d   :  { %57 = vsyncpa [#allocation4], 1 }

</bundles_post_ra>
